<compile_context>
chip_gen: v6e
topology: v6e:2x2x1
jax: 0.10.0
libtpu: 0.0.40
codegen_flags: <defaults>
</compile_context>

<pallas_src>
import functools

import jax
import jax.numpy as jnp
from jax.experimental import pallas as pl
from jax.experimental.pallas import tpu as pltpu


def _encoder_lstm_kernel(x_ref, wih_ref, whh_ref, b_ref, out_ref, *, T, Bp):
    """Whole-sequence LSTM in one kernel invocation.

    x_ref   : (T*Bp, E)  time-major, batch-padded input rows
    wih_ref : (E, 4H)    input->gates weights (pre-transposed)
    whh_ref : (H, 4H)    hidden->gates weights (pre-transposed)
    b_ref   : (1, 4H)    folded bias (b_ih + b_hh)
    out_ref : (Bp, H)    final hidden state h_T (padded rows are junk, dropped
                         by the wrapper)
    """
    H = whh_ref.shape[0]

    # ---- Hoisted input projection: one batched MXU matmul over all T*Bp
    # rows, bias folded in once. ----
    gx = jnp.dot(x_ref[...], wih_ref[...],
                 preferred_element_type=jnp.float32)            # (T*Bp, 4H)
    gx = gx + b_ref[...]

    whh = whh_ref[...]                                          # (H, 4H)

    h = jnp.zeros((Bp, H), jnp.float32)
    c = jnp.zeros((Bp, H), jnp.float32)

    # Fully-unrolled serial recurrence (T is a static, small trip count).
    for t in range(T):
        # Only the hidden matmul sits on the serial dependency chain; the
        # gx slice is sublane-tile aligned (t*Bp is a multiple of 8).
        gates = gx[t * Bp:(t + 1) * Bp, :] + jnp.dot(
            h, whh, preferred_element_type=jnp.float32)          # (Bp, 4H)

        # One full-lane sigmoid + one full-lane tanh (EUP), then extract the
        # four gates with static lane slices.  PyTorch order: [i, f, g, o].
        sg = jax.nn.sigmoid(gates)
        tg = jnp.tanh(gates)
        i_g = sg[:, 0 * H:1 * H]
        f_g = sg[:, 1 * H:2 * H]
        g_g = tg[:, 2 * H:3 * H]
        o_g = sg[:, 3 * H:4 * H]

        c = f_g * c + i_g * g_g
        h = o_g * jnp.tanh(c)

    out_ref[...] = h.astype(out_ref.dtype)


def encoder_forward(x_btE, w_ih, w_hh, b_ih, b_hh):
    """Equivalent of Encoder.forward: returns the final LSTM hidden state (B, H).

    x_btE : (B, T, E)  batch-first, like the PyTorch module
    w_ih  : (4H, E), w_hh : (4H, H), b_ih/b_hh : (4H,)  -- PyTorch LSTM shapes
    """
    B, T, E = x_btE.shape
    H = w_hh.shape[1]

    # Pad batch to a multiple of 8 so every per-timestep row-slice in the
    # kernel is sublane-tile aligned.  Padded rows are zeros and independent
    # (LSTM is per-row), dropped at the end.
    Bp = max(8, ((B + 7) // 8) * 8)

    x = x_btE.astype(jnp.float32)
    x_tbe = jnp.transpose(x, (1, 0, 2))                          # (T, B, E)
    if Bp != B:
        x_tbe = jnp.pad(x_tbe, ((0, 0), (0, Bp - B), (0, 0)))
    x_flat = x_tbe.reshape(T * Bp, E)                            # (T*Bp, E)

    # Weight prep: pre-transpose so the kernel does plain row-major MXU
    # matmuls; fold the two biases into one vector.
    wih_t = jnp.transpose(w_ih).astype(jnp.float32)              # (E, 4H)
    whh_t = jnp.transpose(w_hh).astype(jnp.float32)              # (H, 4H)
    bias = (b_ih + b_hh).reshape(1, 4 * H).astype(jnp.float32)   # (1, 4H)

    vmem = lambda: pl.BlockSpec(memory_space=pltpu.MemorySpace.VMEM)

    out = pl.pallas_call(
        functools.partial(_encoder_lstm_kernel, T=T, Bp=Bp),
        out_shape=jax.ShapeDtypeStruct((Bp, H), jnp.float32),
        in_specs=[vmem(), vmem(), vmem(), vmem()],
        out_specs=vmem(),
    )(x_flat, wih_t, whh_t, bias)
    return out[:B]


def _reference_lstm(x_btE, w_ih, w_hh, b_ih, b_hh):
    """Pure-JAX reference of the same PyTorch LSTM forward (for validation)."""
    B, T, E = x_btE.shape
    H = w_hh.shape[1]
    wih_t = w_ih.T
    whh_t = w_hh.T
    bias = b_ih + b_hh

    def step(carry, x_t):
        h, c = carry
        gates = x_t @ wih_t + h @ whh_t + bias
        i = jax.nn.sigmoid(gates[:, 0 * H:1 * H])
        f = jax.nn.sigmoid(gates[:, 1 * H:2 * H])
        g = jnp.tanh(gates[:, 2 * H:3 * H])
        o = jax.nn.sigmoid(gates[:, 3 * H:4 * H])
        c = f * c + i * g
        h = o * jnp.tanh(c)
        return (h, c), None

    h0 = jnp.zeros((B, H), jnp.float32)
    c0 = jnp.zeros((B, H), jnp.float32)
    (hT, _), _ = jax.lax.scan(step, (h0, c0), jnp.transpose(x_btE, (1, 0, 2)))
    return hT


if __name__ == "__main__":
    # Small shapes consistent with the module: emb_size=32, out_size=32.
    B, T, E, H = 2, 8, 32, 32

    key = jax.random.PRNGKey(0)
    kx, k1, k2, k3, k4 = jax.random.split(key, 5)

    # Deterministic init matching PyTorch LSTM default U(-1/sqrt(H), 1/sqrt(H)).
    bound = 1.0 / jnp.sqrt(jnp.array(H, jnp.float32))
    w_ih = jax.random.uniform(k1, (4 * H, E), jnp.float32, -bound, bound)
    w_hh = jax.random.uniform(k2, (4 * H, H), jnp.float32, -bound, bound)
    b_ih = jax.random.uniform(k3, (4 * H,), jnp.float32, -bound, bound)
    b_hh = jax.random.uniform(k4, (4 * H,), jnp.float32, -bound, bound)

    x = jax.random.normal(kx, (B, T, E), jnp.float32)

    out = encoder_forward(x, w_ih, w_hh, b_ih, b_hh)
    out = jax.block_until_ready(out)

    ref = _reference_lstm(x, w_ih, w_hh, b_ih, b_hh)
    assert out.shape == (B, H)
    assert jnp.allclose(out, ref, rtol=1e-4, atol=1e-4), "mismatch vs reference"

    print("KERNEL_OK")
</pallas_src>

<mosaic_0001>
module attributes {stable_mosaic.version = 11 : i64} {
  func.func @_encoder_lstm_kernel(%arg0: memref<64x32xf32, #tpu.memory_space<vmem>>, %arg1: memref<32x128xf32, #tpu.memory_space<vmem>>, %arg2: memref<32x128xf32, #tpu.memory_space<vmem>>, %arg3: memref<1x128xf32, #tpu.memory_space<vmem>>, %arg4: memref<8x32xf32, #tpu.memory_space<vmem>>) attributes {dimension_semantics = [], scalar_prefetch = 0 : i64, scratch_operands = 0 : i64, tpu.core_type = #tpu.core_type<tc>} {
    %c0 = arith.constant 0 : index
    %c0_0 = arith.constant 0 : index
    %0 = vector.load %arg0[%c0, %c0_0] : memref<64x32xf32, #tpu.memory_space<vmem>>, vector<64x32xf32>
    %c0_1 = arith.constant 0 : index
    %c0_2 = arith.constant 0 : index
    %1 = vector.load %arg1[%c0_1, %c0_2] : memref<32x128xf32, #tpu.memory_space<vmem>>, vector<32x128xf32>
    %cst = arith.constant dense<0.000000e+00> : vector<64x128xf32>
    %2 = tpu.matmul %0, %1, %cst {dimension_numbers = #tpu.dot_dimension_numbers<[1], [0], [0], [1], [0, 0, 1, 1], [], []>} : vector<64x32xf32>, vector<32x128xf32>, vector<64x128xf32> -> vector<64x128xf32>
    %c0_3 = arith.constant 0 : index
    %c0_4 = arith.constant 0 : index
    %3 = vector.load %arg3[%c0_3, %c0_4] : memref<1x128xf32, #tpu.memory_space<vmem>>, vector<1x128xf32>
    %4 = vector.broadcast %3 : vector<1x128xf32> to vector<64x128xf32>
    %5 = arith.addf %2, %4 : vector<64x128xf32>
    %c0_5 = arith.constant 0 : index
    %c0_6 = arith.constant 0 : index
    %6 = vector.load %arg2[%c0_5, %c0_6] : memref<32x128xf32, #tpu.memory_space<vmem>>, vector<32x128xf32>
    %cst_7 = arith.constant 0.000000e+00 : f32
    %7 = vector.broadcast %cst_7 : f32 to vector<8x32xf32>
    %cst_8 = arith.constant 0.000000e+00 : f32
    %8 = vector.broadcast %cst_8 : f32 to vector<8x32xf32>
    %9 = vector.extract_strided_slice %5 {offsets = [0, 0], sizes = [8, 128], strides = [1, 1]} : vector<64x128xf32> to vector<8x128xf32>
    %cst_9 = arith.constant dense<0.000000e+00> : vector<8x128xf32>
    %10 = tpu.matmul %7, %6, %cst_9 {dimension_numbers = #tpu.dot_dimension_numbers<[1], [0], [0], [1], [0, 0, 1, 1], [], []>} : vector<8x32xf32>, vector<32x128xf32>, vector<8x128xf32> -> vector<8x128xf32>
    %11 = arith.addf %9, %10 : vector<8x128xf32>
    %12 = arith.negf %11 : vector<8x128xf32>
    %13 = math.exp %12 : vector<8x128xf32>
    %cst_10 = arith.constant 1.000000e+00 : f32
    %14 = vector.broadcast %cst_10 : f32 to vector<8x128xf32>
    %15 = arith.addf %14, %13 : vector<8x128xf32>
    %16 = arith.divf %14, %15 : vector<8x128xf32>
    %17 = math.tanh %11 : vector<8x128xf32>
    %18 = vector.extract_strided_slice %16 {offsets = [0, 0], sizes = [8, 32], strides = [1, 1]} : vector<8x128xf32> to vector<8x32xf32>
    %19 = vector.extract_strided_slice %16 {offsets = [0, 32], sizes = [8, 32], strides = [1, 1]} : vector<8x128xf32> to vector<8x32xf32>
    %20 = vector.extract_strided_slice %17 {offsets = [0, 64], sizes = [8, 32], strides = [1, 1]} : vector<8x128xf32> to vector<8x32xf32>
    %21 = vector.extract_strided_slice %16 {offsets = [0, 96], sizes = [8, 32], strides = [1, 1]} : vector<8x128xf32> to vector<8x32xf32>
    %22 = arith.mulf %19, %8 : vector<8x32xf32>
    %23 = arith.mulf %18, %20 : vector<8x32xf32>
    %24 = arith.addf %22, %23 : vector<8x32xf32>
    %25 = math.tanh %24 : vector<8x32xf32>
    %26 = arith.mulf %21, %25 : vector<8x32xf32>
    %27 = vector.extract_strided_slice %5 {offsets = [8, 0], sizes = [8, 128], strides = [1, 1]} : vector<64x128xf32> to vector<8x128xf32>
    %cst_11 = arith.constant dense<0.000000e+00> : vector<8x128xf32>
    %28 = tpu.matmul %26, %6, %cst_11 {dimension_numbers = #tpu.dot_dimension_numbers<[1], [0], [0], [1], [0, 0, 1, 1], [], []>} : vector<8x32xf32>, vector<32x128xf32>, vector<8x128xf32> -> vector<8x128xf32>
    %29 = arith.addf %27, %28 : vector<8x128xf32>
    %30 = arith.negf %29 : vector<8x128xf32>
    %31 = math.exp %30 : vector<8x128xf32>
    %cst_12 = arith.constant 1.000000e+00 : f32
    %32 = vector.broadcast %cst_12 : f32 to vector<8x128xf32>
    %33 = arith.addf %32, %31 : vector<8x128xf32>
    %34 = arith.divf %32, %33 : vector<8x128xf32>
    %35 = math.tanh %29 : vector<8x128xf32>
    %36 = vector.extract_strided_slice %34 {offsets = [0, 0], sizes = [8, 32], strides = [1, 1]} : vector<8x128xf32> to vector<8x32xf32>
    %37 = vector.extract_strided_slice %34 {offsets = [0, 32], sizes = [8, 32], strides = [1, 1]} : vector<8x128xf32> to vector<8x32xf32>
    %38 = vector.extract_strided_slice %35 {offsets = [0, 64], sizes = [8, 32], strides = [1, 1]} : vector<8x128xf32> to vector<8x32xf32>
    %39 = vector.extract_strided_slice %34 {offsets = [0, 96], sizes = [8, 32], strides = [1, 1]} : vector<8x128xf32> to vector<8x32xf32>
    %40 = arith.mulf %37, %24 : vector<8x32xf32>
    %41 = arith.mulf %36, %38 : vector<8x32xf32>
    %42 = arith.addf %40, %41 : vector<8x32xf32>
    %43 = math.tanh %42 : vector<8x32xf32>
    %44 = arith.mulf %39, %43 : vector<8x32xf32>
    %45 = vector.extract_strided_slice %5 {offsets = [16, 0], sizes = [8, 128], strides = [1, 1]} : vector<64x128xf32> to vector<8x128xf32>
    %cst_13 = arith.constant dense<0.000000e+00> : vector<8x128xf32>
    %46 = tpu.matmul %44, %6, %cst_13 {dimension_numbers = #tpu.dot_dimension_numbers<[1], [0], [0], [1], [0, 0, 1, 1], [], []>} : vector<8x32xf32>, vector<32x128xf32>, vector<8x128xf32> -> vector<8x128xf32>
    %47 = arith.addf %45, %46 : vector<8x128xf32>
    %48 = arith.negf %47 : vector<8x128xf32>
    %49 = math.exp %48 : vector<8x128xf32>
    %cst_14 = arith.constant 1.000000e+00 : f32
    %50 = vector.broadcast %cst_14 : f32 to vector<8x128xf32>
    %51 = arith.addf %50, %49 : vector<8x128xf32>
    %52 = arith.divf %50, %51 : vector<8x128xf32>
    %53 = math.tanh %47 : vector<8x128xf32>
    %54 = vector.extract_strided_slice %52 {offsets = [0, 0], sizes = [8, 32], strides = [1, 1]} : vector<8x128xf32> to vector<8x32xf32>
    %55 = vector.extract_strided_slice %52 {offsets = [0, 32], sizes = [8, 32], strides = [1, 1]} : vector<8x128xf32> to vector<8x32xf32>
    %56 = vector.extract_strided_slice %53 {offsets = [0, 64], sizes = [8, 32], strides = [1, 1]} : vector<8x128xf32> to vector<8x32xf32>
    %57 = vector.extract_strided_slice %52 {offsets = [0, 96], sizes = [8, 32], strides = [1, 1]} : vector<8x128xf32> to vector<8x32xf32>
    %58 = arith.mulf %55, %42 : vector<8x32xf32>
    %59 = arith.mulf %54, %56 : vector<8x32xf32>
    %60 = arith.addf %58, %59 : vector<8x32xf32>
    %61 = math.tanh %60 : vector<8x32xf32>
    %62 = arith.mulf %57, %61 : vector<8x32xf32>
    %63 = vector.extract_strided_slice %5 {offsets = [24, 0], sizes = [8, 128], strides = [1, 1]} : vector<64x128xf32> to vector<8x128xf32>
    %cst_15 = arith.constant dense<0.000000e+00> : vector<8x128xf32>
    %64 = tpu.matmul %62, %6, %cst_15 {dimension_numbers = #tpu.dot_dimension_numbers<[1], [0], [0], [1], [0, 0, 1, 1], [], []>} : vector<8x32xf32>, vector<32x128xf32>, vector<8x128xf32> -> vector<8x128xf32>
    %65 = arith.addf %63, %64 : vector<8x128xf32>
    %66 = arith.negf %65 : vector<8x128xf32>
    %67 = math.exp %66 : vector<8x128xf32>
    %cst_16 = arith.constant 1.000000e+00 : f32
    %68 = vector.broadcast %cst_16 : f32 to vector<8x128xf32>
    %69 = arith.addf %68, %67 : vector<8x128xf32>
    %70 = arith.divf %68, %69 : vector<8x128xf32>
    %71 = math.tanh %65 : vector<8x128xf32>
    %72 = vector.extract_strided_slice %70 {offsets = [0, 0], sizes = [8, 32], strides = [1, 1]} : vector<8x128xf32> to vector<8x32xf32>
    %73 = vector.extract_strided_slice %70 {offsets = [0, 32], sizes = [8, 32], strides = [1, 1]} : vector<8x128xf32> to vector<8x32xf32>
    %74 = vector.extract_strided_slice %71 {offsets = [0, 64], sizes = [8, 32], strides = [1, 1]} : vector<8x128xf32> to vector<8x32xf32>
    %75 = vector.extract_strided_slice %70 {offsets = [0, 96], sizes = [8, 32], strides = [1, 1]} : vector<8x128xf32> to vector<8x32xf32>
    %76 = arith.mulf %73, %60 : vector<8x32xf32>
    %77 = arith.mulf %72, %74 : vector<8x32xf32>
    %78 = arith.addf %76, %77 : vector<8x32xf32>
    %79 = math.tanh %78 : vector<8x32xf32>
    %80 = arith.mulf %75, %79 : vector<8x32xf32>
    %81 = vector.extract_strided_slice %5 {offsets = [32, 0], sizes = [8, 128], strides = [1, 1]} : vector<64x128xf32> to vector<8x128xf32>
    %cst_17 = arith.constant dense<0.000000e+00> : vector<8x128xf32>
    %82 = tpu.matmul %80, %6, %cst_17 {dimension_numbers = #tpu.dot_dimension_numbers<[1], [0], [0], [1], [0, 0, 1, 1], [], []>} : vector<8x32xf32>, vector<32x128xf32>, vector<8x128xf32> -> vector<8x128xf32>
    %83 = arith.addf %81, %82 : vector<8x128xf32>
    %84 = arith.negf %83 : vector<8x128xf32>
    %85 = math.exp %84 : vector<8x128xf32>
    %cst_18 = arith.constant 1.000000e+00 : f32
    %86 = vector.broadcast %cst_18 : f32 to vector<8x128xf32>
    %87 = arith.addf %86, %85 : vector<8x128xf32>
    %88 = arith.divf %86, %87 : vector<8x128xf32>
    %89 = math.tanh %83 : vector<8x128xf32>
    %90 = vector.extract_strided_slice %88 {offsets = [0, 0], sizes = [8, 32], strides = [1, 1]} : vector<8x128xf32> to vector<8x32xf32>
    %91 = vector.extract_strided_slice %88 {offsets = [0, 32], sizes = [8, 32], strides = [1, 1]} : vector<8x128xf32> to vector<8x32xf32>
    %92 = vector.extract_strided_slice %89 {offsets = [0, 64], sizes = [8, 32], strides = [1, 1]} : vector<8x128xf32> to vector<8x32xf32>
    %93 = vector.extract_strided_slice %88 {offsets = [0, 96], sizes = [8, 32], strides = [1, 1]} : vector<8x128xf32> to vector<8x32xf32>
    %94 = arith.mulf %91, %78 : vector<8x32xf32>
    %95 = arith.mulf %90, %92 : vector<8x32xf32>
    %96 = arith.addf %94, %95 : vector<8x32xf32>
    %97 = math.tanh %96 : vector<8x32xf32>
    %98 = arith.mulf %93, %97 : vector<8x32xf32>
    %99 = vector.extract_strided_slice %5 {offsets = [40, 0], sizes = [8, 128], strides = [1, 1]} : vector<64x128xf32> to vector<8x128xf32>
    %cst_19 = arith.constant dense<0.000000e+00> : vector<8x128xf32>
    %100 = tpu.matmul %98, %6, %cst_19 {dimension_numbers = #tpu.dot_dimension_numbers<[1], [0], [0], [1], [0, 0, 1, 1], [], []>} : vector<8x32xf32>, vector<32x128xf32>, vector<8x128xf32> -> vector<8x128xf32>
    %101 = arith.addf %99, %100 : vector<8x128xf32>
    %102 = arith.negf %101 : vector<8x128xf32>
    %103 = math.exp %102 : vector<8x128xf32>
    %cst_20 = arith.constant 1.000000e+00 : f32
    %104 = vector.broadcast %cst_20 : f32 to vector<8x128xf32>
    %105 = arith.addf %104, %103 : vector<8x128xf32>
    %106 = arith.divf %104, %105 : vector<8x128xf32>
    %107 = math.tanh %101 : vector<8x128xf32>
    %108 = vector.extract_strided_slice %106 {offsets = [0, 0], sizes = [8, 32], strides = [1, 1]} : vector<8x128xf32> to vector<8x32xf32>
    %109 = vector.extract_strided_slice %106 {offsets = [0, 32], sizes = [8, 32], strides = [1, 1]} : vector<8x128xf32> to vector<8x32xf32>
    %110 = vector.extract_strided_slice %107 {offsets = [0, 64], sizes = [8, 32], strides = [1, 1]} : vector<8x128xf32> to vector<8x32xf32>
    %111 = vector.extract_strided_slice %106 {offsets = [0, 96], sizes = [8, 32], strides = [1, 1]} : vector<8x128xf32> to vector<8x32xf32>
    %112 = arith.mulf %109, %96 : vector<8x32xf32>
    %113 = arith.mulf %108, %110 : vector<8x32xf32>
    %114 = arith.addf %112, %113 : vector<8x32xf32>
    %115 = math.tanh %114 : vector<8x32xf32>
    %116 = arith.mulf %111, %115 : vector<8x32xf32>
    %117 = vector.extract_strided_slice %5 {offsets = [48, 0], sizes = [8, 128], strides = [1, 1]} : vector<64x128xf32> to vector<8x128xf32>
    %cst_21 = arith.constant dense<0.000000e+00> : vector<8x128xf32>
    %118 = tpu.matmul %116, %6, %cst_21 {dimension_numbers = #tpu.dot_dimension_numbers<[1], [0], [0], [1], [0, 0, 1, 1], [], []>} : vector<8x32xf32>, vector<32x128xf32>, vector<8x128xf32> -> vector<8x128xf32>
    %119 = arith.addf %117, %118 : vector<8x128xf32>
    %120 = arith.negf %119 : vector<8x128xf32>
    %121 = math.exp %120 : vector<8x128xf32>
    %cst_22 = arith.constant 1.000000e+00 : f32
    %122 = vector.broadcast %cst_22 : f32 to vector<8x128xf32>
    %123 = arith.addf %122, %121 : vector<8x128xf32>
    %124 = arith.divf %122, %123 : vector<8x128xf32>
    %125 = math.tanh %119 : vector<8x128xf32>
    %126 = vector.extract_strided_slice %124 {offsets = [0, 0], sizes = [8, 32], strides = [1, 1]} : vector<8x128xf32> to vector<8x32xf32>
    %127 = vector.extract_strided_slice %124 {offsets = [0, 32], sizes = [8, 32], strides = [1, 1]} : vector<8x128xf32> to vector<8x32xf32>
    %128 = vector.extract_strided_slice %125 {offsets = [0, 64], sizes = [8, 32], strides = [1, 1]} : vector<8x128xf32> to vector<8x32xf32>
    %129 = vector.extract_strided_slice %124 {offsets = [0, 96], sizes = [8, 32], strides = [1, 1]} : vector<8x128xf32> to vector<8x32xf32>
    %130 = arith.mulf %127, %114 : vector<8x32xf32>
    %131 = arith.mulf %126, %128 : vector<8x32xf32>
    %132 = arith.addf %130, %131 : vector<8x32xf32>
    %133 = math.tanh %132 : vector<8x32xf32>
    %134 = arith.mulf %129, %133 : vector<8x32xf32>
    %135 = vector.extract_strided_slice %5 {offsets = [56, 0], sizes = [8, 128], strides = [1, 1]} : vector<64x128xf32> to vector<8x128xf32>
    %cst_23 = arith.constant dense<0.000000e+00> : vector<8x128xf32>
    %136 = tpu.matmul %134, %6, %cst_23 {dimension_numbers = #tpu.dot_dimension_numbers<[1], [0], [0], [1], [0, 0, 1, 1], [], []>} : vector<8x32xf32>, vector<32x128xf32>, vector<8x128xf32> -> vector<8x128xf32>
    %137 = arith.addf %135, %136 : vector<8x128xf32>
    %138 = arith.negf %137 : vector<8x128xf32>
    %139 = math.exp %138 : vector<8x128xf32>
    %cst_24 = arith.constant 1.000000e+00 : f32
    %140 = vector.broadcast %cst_24 : f32 to vector<8x128xf32>
    %141 = arith.addf %140, %139 : vector<8x128xf32>
    %142 = arith.divf %140, %141 : vector<8x128xf32>
    %143 = math.tanh %137 : vector<8x128xf32>
    %144 = vector.extract_strided_slice %142 {offsets = [0, 0], sizes = [8, 32], strides = [1, 1]} : vector<8x128xf32> to vector<8x32xf32>
    %145 = vector.extract_strided_slice %142 {offsets = [0, 32], sizes = [8, 32], strides = [1, 1]} : vector<8x128xf32> to vector<8x32xf32>
    %146 = vector.extract_strided_slice %143 {offsets = [0, 64], sizes = [8, 32], strides = [1, 1]} : vector<8x128xf32> to vector<8x32xf32>
    %147 = vector.extract_strided_slice %142 {offsets = [0, 96], sizes = [8, 32], strides = [1, 1]} : vector<8x128xf32> to vector<8x32xf32>
    %148 = arith.mulf %145, %132 : vector<8x32xf32>
    %149 = arith.mulf %144, %146 : vector<8x32xf32>
    %150 = arith.addf %148, %149 : vector<8x32xf32>
    %151 = math.tanh %150 : vector<8x32xf32>
    %152 = arith.mulf %147, %151 : vector<8x32xf32>
    %c0_25 = arith.constant 0 : index
    %c0_26 = arith.constant 0 : index
    %153 = vector.load %arg4[%c0_25, %c0_26] : memref<8x32xf32, #tpu.memory_space<vmem>>, vector<8x32xf32>
    tpu.vector_store %arg4[%c0_25, %c0_26], %152 {strides = array<i32>} : memref<8x32xf32, #tpu.memory_space<vmem>>, vector<8x32xf32>,
    return
  }
}

</mosaic_0001>

<bundles_post_ra>
// kernel: tpu_custom_call.1
= control target key start
LH: loop header
LB: loop body
LE: loop exit
PB: predicated region body
PF: predicated region fallthrough
CT: control target
= control target key end

     0   :  { %v1263_v3 = vmov 0.0   ;;  %vm37_vm0 = vcmask 261120   ;;  %s1506_s0 = inlined_call_operand.vmem [shape: f32[64,32], index: 0, kind: input, shape index: {}]   ;;  %s1507_s1 = inlined_call_operand.vmem [shape: f32[32,128], index: 1, kind: input, shape index: {}]   ;;  %s1508_s2 = inlined_call_operand.vmem [shape: f32[32,128], index: 2, kind: input, shape index: {}]   ;;  %s1509_s3 = inlined_call_operand.vmem [shape: f32[1,128], index: 3, kind: input, shape index: {}]   ;;  %s1510_s4 = inlined_call_operand.hbm [shape: f32[8,32], index: 4, kind: output, shape index: {}]  }
   0x1   :  { %v29_v0 = vld [vmem:[%s1507_s1 + $0x18] sm:$0xff]  ;;  %v28_v1 = vld [vmem:[%s1507_s1 + $0x10] sm:$0xff]  ;;  %1084 = vmatprep.subr.mxu1 %v1263_v3  ;;  %v27_v5 = vld [vmem:[%s1507_s1 + $0x8] sm:$0xff] }
   0x2   :  { %v1302_v2 = vld [vmem:[%s1508_s2 + $0x18] sm:$0xff]  ;;  %1064 = vmatprep.subr.mxu0 %v29_v0  ;;  %v1308_v4 = vld [vmem:[%s1508_s2 + $0x10] sm:$0xff]  ;;  %v18_v6 = vld [vmem:[%s1506_s0] sm:$0xff] }
   0x3   :  { %1065 = vmatpush3.msra.mxu0 %v29_v0  ;;  %1085 = vmatpush3.msra.mxu1 %v1302_v2 }
   0x4   :  { %1066 = vmatprep.subr.mxu0 %v28_v1  ;;  %1086 = vmatprep.subr.mxu1 %v1263_v3 }
   0x5   :  { %9 = vsyncpa [#allocation3], 0  ;;  %1067 = vmatpush3.msra.mxu0 %v28_v1  ;;  %1087 = vmatpush3.msra.mxu1 %v1308_v4  ;;  %v26_v7 = vld [vmem:[%s1507_s1] sm:$0xff]  ;;  %v1325_v8 = vld [vmem:[%s1508_s2 + $0x8] sm:$0xff]  ;;  %vm1264_vm1 = vmmov 0   ;;  %s1265_s9 = smov 64  }
   0x6   :  { %1068 = vmatprep.subr.mxu0 %v27_v5  ;;  %1088 = vmatprep.subr.mxu1 %v1263_v3  ;;  %v19_v9 = vld [vmem:[%s1506_s0 + $0x8] sm:$0xff]  ;;  %v1335_v10 = vld [vmem:[%s1508_s2] sm:$0xff]  ;;  %v20_v46 = vld [vmem:[%s1506_s0 + $0x10] sm:$0xff] }
   0x7   :  { %1069 = vmatpush3.msra.mxu0 %v27_v5  ;;  %1072 = vmatprep.mubr.msk.f32.mxu0 %vm37_vm0, %v18_v6  ;;  %v1367_v12 = vld [vmem:[%s1509_s3] ss:$0 sm:$0xff]  ;;  %s1266_s3 = smov 32   ;;  %v21_v47 = vld [vmem:[%s1506_s0 + $0x18] sm:$0xff]  ;;  %v23_v49 = vld [vmem:[%s1506_s0 + $0x28] sm:$0xff] }
   0x8   :  { %1070 = vmatprep.subr.mxu0 %v26_v7  ;;  %1089 = vmatpush3.msra.mxu1 %v1325_v8  ;;  %v22_v48 = vld [vmem:[%s1506_s0 + $0x20] sm:$0xff]  ;;  %v24_v50 = vld [vmem:[%s1506_s0 + $0x30] sm:$0xff]  ;;  %v25_v51 = vld [vmem:[%s1506_s0 + $0x38] sm:$0xff]  ;;  %s1267_s0 = smov [#allocation2]  }
   0x9   :  { %1071 = vmatpush3.msra.mxu0 %v26_v7  ;;  %1090 = vmatprep.subr.mxu1 %v1263_v3  ;;  %s980_s22 = sshll.u32 %s1267_s0, 4  ;;  %s981_s22 = int_to_ptr.vmem [resolvable:$true] %s980_s22 }
   0xa   :  { %1073 = vmatmul.mubr.msk.f32.vlgmr.msra.gmra.mxu0 %vm37_vm0, %v19_v9  ;;  %1091 = vmatpush3.msra.mxu1 %v1335_v10  ;;  %s1241_s23 = scalar_lea.vmem %s981_s22, 128  ;;  %p1246_p1 = scmp.lt.s32.totalorder %s981_s22, %s981_s22 }
   0xb   :  { %1092 = vmatprep.mubr.msk.f32.mxu1 %vm1264_vm1, %v1263_v3  ;;  %1095 = vmatprep.subr.mxu1 %v1263_v3  ;;  %p1242_p0 = scmp.ne.s32.totalorder %s981_s22, %s1241_s23  ;;  %p1247_p2 = scmp.lt.s32.totalorder %s1241_s23, %s1241_s23 }
   0xc   :  { %1093 = vmatmul.mubr.f32.vlgmr.msra.gmra.mxu1 %v1263_v3  ;;  %1106 = vmatprep.subr.mxu0 %v1263_v3 }
   0xd   :  { %1096 = vmatpush3.msra.mxu1 %v1302_v2  ;;  %1103 = vmatprep.mubr.msk.f32.mxu1 %vm1264_vm1, %v1263_v3  ;;  %p1248_p3 = por %p1247_p2, %p1246_p1 }
   0xe   :  { %1097 = vmatprep.subr.mxu1 %v1263_v3  ;;  %1107 = vmatpush3.msra.mxu0 %v1302_v2 }
   0xf   :  { %1098 = vmatpush3.msra.mxu1 %v1308_v4  ;;  %1108 = vmatprep.subr.mxu0 %v1263_v3  ;;  %p1249_p4 = pnand %p1248_p3, %p1242_p0 }
  0x10   :  { %1099 = vmatprep.subr.mxu1 %v1263_v3  ;;  %1109 = vmatpush3.msra.mxu0 %v1308_v4 }
  0x11   :  { %1100 = vmatpush3.msra.mxu1 %v1325_v8  ;;  %1110 = vmatprep.subr.mxu0 %v1263_v3 }
  0x12   :  { %1101 = vmatprep.subr.mxu1 %v1263_v3  ;;  %1111 = vmatpush3.msra.mxu0 %v1325_v8 }
  0x13   :  { %1102 = vmatpush3.msra.mxu1 %v1335_v10  ;;  %1112 = vmatprep.subr.mxu0 %v1263_v3 }
  0x14   :  { %1113 = vmatpush3.msra.mxu0 %v1335_v10  ;;  %1117 = vmatprep.subr.mxu1 %v1263_v3 }
  0x15   :  { %1128 = vmatprep.subr.mxu0 %v1263_v3  ;;  %1075 = vmatprep.mubr.msk.f32.mxu0 %vm37_vm0, %v20_v46 }
  0x16   :  { %1076 = vmatmul.mubr.msk.f32.gmra.mxu0 %vm37_vm0, %v21_v47 }
  0x17   :  { %1078 = vmatprep.mubr.msk.f32.mxu0 %vm37_vm0, %v22_v48 }
  0x1a   :  { %1079 = vmatmul.mubr.msk.f32.gmra.mxu0 %vm37_vm0, %v23_v49 }
  0x1b   :  { %1081 = vmatprep.mubr.msk.f32.mxu0 %vm37_vm0, %v24_v50 }
  0x1e   :  { %1082 = vmatmul.mubr.msk.f32.gmra.mxu0 %vm37_vm0, %v25_v51 }
  0x1f   :  { %1114 = vmatprep.mubr.msk.f32.mxu0 %vm1264_vm1, %v1263_v3 }
  0xca   :  { %v1074_v11 = vpop.f32.mrf.mxu0 }
  0xcb   :  { %v134_v32 = vadd.f32 %v1074_v11, %v1367_v12 }
  0xcc   :  { %v128_v13 = vpop.f32.mrf.mxu0  ;;  %v240_v14 = vpop.f32.mrf.mxu1 }
  0xcd   :  { %v129_v15 = vadd.f32 %v1367_v12, %v128_v13 }
  0xce   :  { %v1094_v16 = vpop.f32.mrf.mxu1 }
  0xcf   :  { %v244_v17 = vadd.f32 %v240_v14, %v129_v15 }
  0xd1   :  { %1177 = vtanh.f32 %v244_v17  ;;  %v997_v19 = vmul.f32 -1.442695, %v244_v17 }
  0xd3   :  { %1179 = vpow2.f32 %v997_v19 }
  0xd6   :  { %v1077_v56 = vpop.f32.mrf.mxu0 }
  0xd8   :  { %v138_v57 = vpop.f32.mrf.mxu0 }
  0xd9   :  { %v139_v62 = vadd.f32 %v1367_v12, %v138_v57 }
  0xda   :  { %v1427_v58 = vpop.f32.mrf.mxu0 }
  0xdc   :  { %v1429_v59 = vpop.f32.mrf.mxu0 }
  0xde   :  { %v1178_v18 = vpop.eup %1177  ;;  %v1431_v60 = vpop.f32.mrf.mxu0 }
  0xdf   :  { %254 = vrot.lane.b32.xlu0 %v1178_v18, %s1265_s9 }
  0xe0   :  { %v1180_v20 = vpop.eup %1179  ;;  %v1433_v61 = vpop.f32.mrf.mxu0 }
  0xe1   :  { %v248_v21 = vadd.f32 1.0, %v1180_v20 }
  0xe3   :  { %1181 = vrcp.f32 %v248_v21 }
  0xf0   :  { %v1182_v22 = vpop.eup %1181 }
  0xf1   :  { %v252_v25 = vmul.f32 0.0, %v1182_v22 }
 0x151   :  { %v255_v23 = vpop.permute.xlu0 %254 }
 0x152   :  { %v257_v24 = vmul.f32 %v1182_v22, %v255_v23 }
 0x154   :  { %259 = vrot.lane.b32.xlu0 %v257_v24, %s1266_s3 }
 0x1c6   :  { %v260_v26 = vpop.permute.xlu0 %259 }
 0x1c7   :  { %v262_v27 = vadd.f32 %v260_v26, %v252_v25 }
 0x1c9   :  { %1183 = vtanh.f32 %v262_v27 }
 0x1d6   :  { %v1184_v28 = vpop.eup %1183 }
 0x1d7   :  { %265 = vrot.lane.b32.xlu1 %v1184_v28, %s1265_s9 }
 0x249   :  { %v266_v29 = vpop.permute.xlu1 %265 }
 0x24a   :  { %v268_v30 = vmul.f32 %v1182_v22, %v266_v29  ;;  %v144_v22 = vadd.f32 %v1077_v56, %v1367_v12 }
 0x24c   :  { %270 = vrot.lane.b32.xlu1 %v268_v30, %s1266_s3 }
 0x2be   :  { %v271_v31 = vpop.permute.xlu1 %270 }
 0x2bf   :  { %1104 = vmatmul.mubr.msk.f32.vlgmr.msra.gmra.mxu1 %vm37_vm0, %v271_v31 }
 0x2c0   :  { %1118 = vmatpush3.msra.mxu1 %v1302_v2  ;;  %1125 = vmatprep.mubr.msk.f32.mxu1 %vm1264_vm1, %v1263_v3 }
 0x2c1   :  { %1119 = vmatprep.subr.mxu1 %v1263_v3 }
 0x2c2   :  { %1120 = vmatpush3.msra.mxu1 %v1308_v4 }
 0x2c3   :  { %1121 = vmatprep.subr.mxu1 %v1263_v3 }
 0x2c4   :  { %1122 = vmatpush3.msra.mxu1 %v1325_v8 }
 0x2c5   :  { %1123 = vmatprep.subr.mxu1 %v1263_v3 }
 0x2c6   :  { %1124 = vmatpush3.msra.mxu1 %v1335_v10 }
 0x2c7   :  { %1139 = vmatprep.subr.mxu1 %v1263_v3 }
 0x37f   :  { %v340_v33 = vpop.f32.mrf.mxu1 }
 0x380   :  { %v344_v34 = vadd.f32 %v340_v33, %v134_v32 }
 0x381   :  { %v1105_v35 = vpop.f32.mrf.mxu1 }
 0x382   :  { %1185 = vtanh.f32 %v344_v34  ;;  %v999_v37 = vmul.f32 -1.442695, %v344_v34 }
 0x384   :  { %1187 = vpow2.f32 %v999_v37 }
 0x38f   :  { %v1186_v36 = vpop.eup %1185 }
 0x390   :  { %354 = vrot.lane.b32.xlu0 %v1186_v36, %s1265_s9 }
 0x391   :  { %v1188_v38 = vpop.eup %1187 }
 0x392   :  { %v348_v39 = vadd.f32 1.0, %v1188_v38 }
 0x394   :  { %1189 = vrcp.f32 %v348_v39 }
 0x3a1   :  { %v1190_v40 = vpop.eup %1189 }
 0x3a2   :  { %v352_v43 = vmul.f32 %v1190_v40, %v262_v27 }
 0x402   :  { %v355_v41 = vpop.permute.xlu0 %354 }
 0x403   :  { %v357_v42 = vmul.f32 %v1190_v40, %v355_v41 }
 0x405   :  { %359 = vrot.lane.b32.xlu1 %v357_v42, %s1266_s3 }
 0x477   :  { %v360_v44 = vpop.permute.xlu1 %359 }
 0x478   :  { %v362_v45 = vadd.f32 %v360_v44, %v352_v43 }
 0x47a   :  { %1191 = vtanh.f32 %v362_v45 }
 0x487   :  { %v1192_v52 = vpop.eup %1191 }
 0x488   :  { %365 = vrot.lane.b32.xlu0 %v1192_v52, %s1265_s9 }
 0x4fa   :  { %v366_v53 = vpop.permute.xlu0 %365 }
 0x4fb   :  { %v368_v54 = vmul.f32 %v1190_v40, %v366_v53  ;;  %v149_v40 = vadd.f32 %v1367_v12, %v1429_v59  ;;  %v154_v59 = vadd.f32 %v1427_v58, %v1367_v12 }
 0x4fd   :  { %370 = vrot.lane.b32.xlu1 %v368_v54, %s1266_s3 }
 0x56f   :  { %v371_v55 = vpop.permute.xlu1 %370 }
 0x570   :  { %1115 = vmatmul.mubr.msk.f32.vlgmr.msra.gmra.mxu0 %vm37_vm0, %v371_v55 }
 0x571   :  { %1129 = vmatpush3.msra.mxu0 %v1302_v2  ;;  %1136 = vmatprep.mubr.msk.f32.mxu0 %vm1264_vm1, %v1263_v3 }
 0x572   :  { %1130 = vmatprep.subr.mxu0 %v1263_v3 }
 0x573   :  { %1131 = vmatpush3.msra.mxu0 %v1308_v4 }
 0x574   :  { %1132 = vmatprep.subr.mxu0 %v1263_v3 }
 0x575   :  { %1133 = vmatpush3.msra.mxu0 %v1325_v8 }
 0x576   :  { %1134 = vmatprep.subr.mxu0 %v1263_v3 }
 0x577   :  { %1135 = vmatpush3.msra.mxu0 %v1335_v10 }
 0x578   :  { %1150 = vmatprep.subr.mxu0 %v1263_v3 }
 0x630   :  { %v440_v63 = vpop.f32.mrf.mxu0 }
 0x631   :  { %v444_v0 = vadd.f32 %v440_v63, %v139_v62 }
 0x632   :  { %v1116_v1 = vpop.f32.mrf.mxu0 }
 0x633   :  { %1193 = vtanh.f32 %v444_v0  ;;  %v1001_v6 = vmul.f32 -1.442695, %v444_v0 }
 0x635   :  { %1195 = vpow2.f32 %v1001_v6 }
 0x640   :  { %v1194_v5 = vpop.eup %1193 }
 0x641   :  { %454 = vrot.lane.b32.xlu0 %v1194_v5, %s1265_s9 }
 0x642   :  { %v1196_v7 = vpop.eup %1195 }
 0x643   :  { %v448_v9 = vadd.f32 1.0, %v1196_v7 }
 0x645   :  { %1197 = vrcp.f32 %v448_v9 }
 0x652   :  { %v1198_v11 = vpop.eup %1197 }
 0x653   :  { %v452_v15 = vmul.f32 %v1198_v11, %v362_v45 }
 0x6b3   :  { %v455_v13 = vpop.permute.xlu0 %454 }
 0x6b4   :  { %v457_v14 = vmul.f32 %v1198_v11, %v455_v13 }
 0x6b6   :  { %459 = vrot.lane.b32.xlu1 %v457_v14, %s1266_s3 }
 0x728   :  { %v460_v16 = vpop.permute.xlu1 %459 }
 0x729   :  { %v462_v17 = vadd.f32 %v460_v16, %v452_v15  ;;  %v159_v15 = vadd.f32 %v1367_v12, %v1433_v61 }
 0x72b   :  { %1199 = vtanh.f32 %v462_v17 }
 0x738   :  { %v1200_v18 = vpop.eup %1199 }
 0x739   :  { %465 = vrot.lane.b32.xlu0 %v1200_v18, %s1265_s9 }
 0x7ab   :  { %v466_v19 = vpop.permute.xlu0 %465 }
 0x7ac   :  { %v468_v20 = vmul.f32 %v1198_v11, %v466_v19 }
 0x7ae   :  { %470 = vrot.lane.b32.xlu1 %v468_v20, %s1266_s3 }
 0x820   :  { %v471_v21 = vpop.permute.xlu1 %470 }
 0x821   :  { %1126 = vmatmul.mubr.msk.f32.vlgmr.msra.gmra.mxu1 %vm37_vm0, %v471_v21 }
 0x822   :  { %1140 = vmatpush3.msra.mxu1 %v1302_v2  ;;  %1147 = vmatprep.mubr.msk.f32.mxu1 %vm1264_vm1, %v1263_v3 }
 0x823   :  { %1141 = vmatprep.subr.mxu1 %v1263_v3 }
 0x824   :  { %1142 = vmatpush3.msra.mxu1 %v1308_v4 }
 0x825   :  { %1143 = vmatprep.subr.mxu1 %v1263_v3 }
 0x826   :  { %1144 = vmatpush3.msra.mxu1 %v1325_v8 }
 0x827   :  { %1145 = vmatprep.subr.mxu1 %v1263_v3 }
 0x828   :  { %1146 = vmatpush3.msra.mxu1 %v1335_v10 }
 0x829   :  { %1161 = vmatprep.subr.mxu1 %v1263_v3 }
 0x8e1   :  { %v540_v23 = vpop.f32.mrf.mxu1 }
 0x8e2   :  { %v544_v24 = vadd.f32 %v540_v23, %v144_v22 }
 0x8e3   :  { %v1127_v25 = vpop.f32.mrf.mxu1 }
 0x8e4   :  { %1201 = vtanh.f32 %v544_v24  ;;  %v1003_v27 = vmul.f32 -1.442695, %v544_v24 }
 0x8e6   :  { %1203 = vpow2.f32 %v1003_v27 }
 0x8f1   :  { %v1202_v26 = vpop.eup %1201 }
 0x8f2   :  { %554 = vrot.lane.b32.xlu0 %v1202_v26, %s1265_s9 }
 0x8f3   :  { %v1204_v28 = vpop.eup %1203 }
 0x8f4   :  { %v548_v29 = vadd.f32 1.0, %v1204_v28 }
 0x8f6   :  { %1205 = vrcp.f32 %v548_v29 }
 0x903   :  { %v1206_v30 = vpop.eup %1205 }
 0x904   :  { %v552_v33 = vmul.f32 %v1206_v30, %v462_v17 }
 0x964   :  { %v555_v31 = vpop.permute.xlu0 %554 }
 0x965   :  { %v557_v32 = vmul.f32 %v1206_v30, %v555_v31 }
 0x967   :  { %559 = vrot.lane.b32.xlu1 %v557_v32, %s1266_s3  ;;  %v164_v32 = vadd.f32 %v1431_v60, %v1367_v12 }
 0x9d9   :  { %v560_v34 = vpop.permute.xlu1 %559 }
 0x9da   :  { %v562_v35 = vadd.f32 %v560_v34, %v552_v33 }
 0x9dc   :  { %1207 = vtanh.f32 %v562_v35 }
 0x9e9   :  { %v1208_v36 = vpop.eup %1207 }
 0x9ea   :  { %565 = vrot.lane.b32.xlu0 %v1208_v36, %s1265_s9 }
 0xa5c   :  { %v566_v37 = vpop.permute.xlu0 %565 }
 0xa5d   :  { %v568_v38 = vmul.f32 %v1206_v30, %v566_v37 }
 0xa5f   :  { %570 = vrot.lane.b32.xlu1 %v568_v38, %s1266_s3 }
 0xad1   :  { %v571_v39 = vpop.permute.xlu1 %570 }
 0xad2   :  { %1137 = vmatmul.mubr.msk.f32.vlgmr.msra.gmra.mxu0 %vm37_vm0, %v571_v39 }
 0xad3   :  { %1151 = vmatpush3.msra.mxu0 %v1302_v2  ;;  %1158 = vmatprep.mubr.msk.f32.mxu0 %vm1264_vm1, %v1263_v3 }
 0xad4   :  { %1152 = vmatprep.subr.mxu0 %v1263_v3 }
 0xad5   :  { %1153 = vmatpush3.msra.mxu0 %v1308_v4 }
 0xad6   :  { %1154 = vmatprep.subr.mxu0 %v1263_v3 }
 0xad7   :  { %1155 = vmatpush3.msra.mxu0 %v1325_v8 }
 0xad8   :  { %1156 = vmatprep.subr.mxu0 %v1263_v3 }
 0xad9   :  { %1157 = vmatpush3.msra.mxu0 %v1335_v10 }
 0xb92   :  { %v640_v41 = vpop.f32.mrf.mxu0 }
 0xb93   :  { %v644_v42 = vadd.f32 %v640_v41, %v149_v40 }
 0xb94   :  { %v1138_v43 = vpop.f32.mrf.mxu0 }
 0xb95   :  { %1209 = vtanh.f32 %v644_v42  ;;  %v1005_v45 = vmul.f32 -1.442695, %v644_v42 }
 0xb97   :  { %1211 = vpow2.f32 %v1005_v45 }
 0xba2   :  { %v1210_v44 = vpop.eup %1209 }
 0xba3   :  { %654 = vrot.lane.b32.xlu0 %v1210_v44, %s1265_s9 }
 0xba4   :  { %v1212_v46 = vpop.eup %1211 }
 0xba5   :  { %v648_v47 = vadd.f32 1.0, %v1212_v46 }
 0xba7   :  { %1213 = vrcp.f32 %v648_v47 }
 0xbb4   :  { %v1214_v48 = vpop.eup %1213 }
 0xbb5   :  { %v652_v51 = vmul.f32 %v1214_v48, %v562_v35 }
 0xc15   :  { %v655_v49 = vpop.permute.xlu0 %654 }
 0xc16   :  { %v657_v50 = vmul.f32 %v1214_v48, %v655_v49 }
 0xc18   :  { %659 = vrot.lane.b32.xlu1 %v657_v50, %s1266_s3 }
 0xc8a   :  { %v660_v52 = vpop.permute.xlu1 %659 }
 0xc8b   :  { %v662_v53 = vadd.f32 %v660_v52, %v652_v51 }
 0xc8d   :  { %1215 = vtanh.f32 %v662_v53 }
 0xc9a   :  { %v1216_v54 = vpop.eup %1215 }
 0xc9b   :  { %665 = vrot.lane.b32.xlu0 %v1216_v54, %s1265_s9 }
 0xd0d   :  { %v666_v55 = vpop.permute.xlu0 %665 }
 0xd0e   :  { %v668_v56 = vmul.f32 %v1214_v48, %v666_v55 }
 0xd10   :  { %670 = vrot.lane.b32.xlu1 %v668_v56, %s1266_s3 }
 0xd82   :  { %v671_v57 = vpop.permute.xlu1 %670 }
 0xd83   :  { %1148 = vmatmul.mubr.msk.f32.vlgmr.msra.gmra.mxu1 %vm37_vm0, %v671_v57 }
 0xd84   :  { %1162 = vmatpush3.msra.mxu1 %v1302_v2  ;;  %1169 = vmatprep.mubr.msk.f32.mxu1 %vm1264_vm1, %v1263_v3 }
 0xd85   :  { %1163 = vmatprep.subr.mxu1 %v1263_v3 }
 0xd86   :  { %1164 = vmatpush3.msra.mxu1 %v1308_v4 }
 0xd87   :  { %1165 = vmatprep.subr.mxu1 %v1263_v3 }
 0xd88   :  { %1166 = vmatpush3.msra.mxu1 %v1325_v8 }
 0xd89   :  { %1167 = vmatprep.subr.mxu1 %v1263_v3 }
 0xd8a   :  { %1168 = vmatpush3.msra.mxu1 %v1335_v10 }
 0xe43   :  { %v740_v62 = vpop.f32.mrf.mxu1 }
 0xe44   :  { %v744_v2 = vadd.f32 %v740_v62, %v154_v59 }
 0xe45   :  { %v1149_v63 = vpop.f32.mrf.mxu1 }
 0xe46   :  { %1217 = vtanh.f32 %v744_v2  ;;  %v1007_v1 = vmul.f32 -1.442695, %v744_v2 }
 0xe48   :  { %1219 = vpow2.f32 %v1007_v1 }
 0xe53   :  { %v1218_v0 = vpop.eup %1217 }
 0xe54   :  { %754 = vrot.lane.b32.xlu0 %v1218_v0, %s1265_s9 }
 0xe55   :  { %v1220_v4 = vpop.eup %1219 }
 0xe56   :  { %v748_v5 = vadd.f32 1.0, %v1220_v4 }
 0xe58   :  { %1221 = vrcp.f32 %v748_v5 }
 0xe65   :  { %v1222_v8 = vpop.eup %1221 }
 0xe66   :  { %v752_v10 = vmul.f32 %v1222_v8, %v662_v53 }
 0xec6   :  { %v755_v6 = vpop.permute.xlu0 %754 }
 0xec7   :  { %v757_v3 = vmul.f32 %v1222_v8, %v755_v6 }
 0xec9   :  { %759 = vrot.lane.b32.xlu1 %v757_v3, %s1266_s3 }
 0xf3b   :  { %v760_v7 = vpop.permute.xlu1 %759 }
 0xf3c   :  { %v762_v58 = vadd.f32 %v760_v7, %v752_v10 }
 0xf3e   :  { %1223 = vtanh.f32 %v762_v58 }
 0xf4b   :  { %v1224_v9 = vpop.eup %1223 }
 0xf4c   :  { %765 = vrot.lane.b32.xlu0 %v1224_v9, %s1265_s9 }
 0xfbe   :  { %v766_v11 = vpop.permute.xlu0 %765 }
 0xfbf   :  { %v768_v13 = vmul.f32 %v1222_v8, %v766_v11 }
 0xfc1   :  { %770 = vrot.lane.b32.xlu1 %v768_v13, %s1266_s3 }
0x1033   :  { %v771_v14 = vpop.permute.xlu1 %770 }
0x1034   :  { %1159 = vmatmul.mubr.msk.f32.vlgmr.msra.gmra.mxu0 %vm37_vm0, %v771_v14 }
0x10f4   :  { %v840_v16 = vpop.f32.mrf.mxu0 }
0x10f5   :  { %v844_v17 = vadd.f32 %v840_v16, %v159_v15 }
0x10f6   :  { %v1160_v18 = vpop.f32.mrf.mxu0 }
0x10f7   :  { %1225 = vtanh.f32 %v844_v17  ;;  %v1009_v20 = vmul.f32 -1.442695, %v844_v17 }
0x10f9   :  { %1227 = vpow2.f32 %v1009_v20 }
0x1104   :  { %v1226_v19 = vpop.eup %1225 }
0x1105   :  { %854 = vrot.lane.b32.xlu0 %v1226_v19, %s1265_s9 }
0x1106   :  { %v1228_v21 = vpop.eup %1227 }
0x1107   :  { %v848_v22 = vadd.f32 1.0, %v1228_v21 }
0x1109   :  { %1229 = vrcp.f32 %v848_v22 }
0x1116   :  { %v1230_v23 = vpop.eup %1229 }
0x1117   :  { %v852_v26 = vmul.f32 %v1230_v23, %v762_v58 }
0x1177   :  { %v855_v24 = vpop.permute.xlu0 %854 }
0x1178   :  { %v857_v25 = vmul.f32 %v1230_v23, %v855_v24 }
0x117a   :  { %859 = vrot.lane.b32.xlu1 %v857_v25, %s1266_s3 }
0x11ec   :  { %v860_v27 = vpop.permute.xlu1 %859 }
0x11ed   :  { %v862_v61 = vadd.f32 %v860_v27, %v852_v26 }
0x11ef   :  { %1231 = vtanh.f32 %v862_v61 }
0x11fc   :  { %v1232_v28 = vpop.eup %1231 }
0x11fd   :  { %865 = vrot.lane.b32.xlu0 %v1232_v28, %s1265_s9 }
0x126f   :  { %v866_v29 = vpop.permute.xlu0 %865 }
0x1270   :  { %v868_v30 = vmul.f32 %v1230_v23, %v866_v29 }
0x1272   :  { %870 = vrot.lane.b32.xlu1 %v868_v30, %s1266_s3 }
0x12e4   :  { %v871_v31 = vpop.permute.xlu1 %870 }
0x12e5   :  { %1170 = vmatmul.mubr.msk.f32.vlgmr.msra.gmra.mxu1 %vm37_vm0, %v871_v31 }
0x13a5   :  { %v940_v33 = vpop.f32.mrf.mxu1 }
0x13a6   :  { %v944_v34 = vadd.f32 %v940_v33, %v164_v32 }
0x13a7   :  { %v1171_v35 = vpop.f32.mrf.mxu1 }
0x13a8   :  { %1233 = vtanh.f32 %v944_v34  ;;  %v1011_v37 = vmul.f32 -1.442695, %v944_v34 }
0x13aa   :  { %1235 = vpow2.f32 %v1011_v37 }
0x13b5   :  { %v1234_v36 = vpop.eup %1233 }
0x13b6   :  { %954 = vrot.lane.b32.xlu0 %v1234_v36, %s1265_s9 }
0x13b7   :  { %v1236_v38 = vpop.eup %1235 }
0x13b8   :  { %v948_v39 = vadd.f32 1.0, %v1236_v38 }
0x13ba   :  { %1237 = vrcp.f32 %v948_v39 }
0x13c7   :  { %v1238_v40 = vpop.eup %1237 }
0x13c8   :  { %v952_v43 = vmul.f32 %v1238_v40, %v862_v61 }
0x1428   :  { %v955_v41 = vpop.permute.xlu0 %954 }
0x1429   :  { %v957_v42 = vmul.f32 %v1238_v40, %v955_v41 }
0x142b   :  { %959 = vrot.lane.b32.xlu1 %v957_v42, %s1266_s3 }
0x149d   :  { %v960_v44 = vpop.permute.xlu1 %959 }
0x149e   :  { %v962_v12 = vadd.f32 %v960_v44, %v952_v43 }
0x14a0   :  { %1239 = vtanh.f32 %v962_v12 }
0x14ad   :  { %v1240_v60 = vpop.eup %1239 }
0x14ae   :  { %965 = vrot.lane.b32.xlu0 %v1240_v60, %s1265_s9 }
0x1520   :  { %v966_v45 = vpop.permute.xlu0 %965 }
0x1521   :  { %v968_v46 = vmul.f32 %v1238_v40, %v966_v45 }
0x1523   :  { %970 = vrot.lane.b32.xlu1 %v968_v46, %s1266_s3 }
0x1595   :  { %v971_v47 = vpop.permute.xlu1 %970 }
0x1596   :  { %973 = vst.msk [vmem:[#allocation2] sm:$0xff] %vm37_vm0, %v971_v47 }
0x1597   :  { %1252 = shalt.err (!%p1249_p4)
}
0x1598   :  { %983 = dma.vmem_to_hbm [thread:$0]  %s981_s22, 128, %s1510_s4, [#allocation3]  }
0x1599   :  { %1261 = dma.done.wait [#allocation3], 128  }
0x159a   :  { %1262 = vsyncadd [#allocation3], 4294967168 }
0x159b   :  { %987 = vsyncpa [#allocation3], 1 }

</bundles_post_ra>
